<compile_context>
chip_gen: v5e
topology: v5e:2x2
jax: 0.10.0
libtpu: 0.0.40
codegen_flags: <defaults>
</compile_context>

<pallas_src>
import functools

import jax
import jax.numpy as jnp
from jax.experimental import pallas as pl
from jax.experimental.pallas import tpu as pltpu


# --------------------------- sizing helpers ----------------------------------

def _vmem_capacity_bytes():
    """Physical VMEM of the local TPU; conservative fallback if unqueryable."""
    try:
        return int(pltpu.get_tpu_info().vmem_capacity_bytes)
    except Exception:
        return 64 * 1024 * 1024  # v7x-sized fallback: safe on every generation


def _choose_block_b(B, T, D, h_dtype, vmem_budget_bytes):
    """Pick the batch-tile size that fits the VMEM budget.

    Per grid step the live footprint is roughly:
      2x double-buffered h block (native dtype) + ~3 f32 temporaries the size
      of the block (tanh(h), exp/score tile, h*alpha), all in the *padded*
      VMEM layout (sublane dim T -> multiple of 8, lane dim D -> multiple of
      128). Output blocks are negligible next to that.
    """
    t_pad = ((T + 7) // 8) * 8
    d_pad = ((D + 127) // 128) * 128
    elt = jnp.dtype(h_dtype).itemsize
    row_bytes = t_pad * d_pad * (2 * elt + 3 * 4)
    cap = max(1, vmem_budget_bytes // row_bytes)
    if cap >= 8:
        cap = (cap // 8) * 8          # keep the out-block sublane dim 8-aligned
    block_b = int(min(B, cap))
    # Prefer >= 2 grid steps: shards the "parallel" batch axis across both v7x
    # TensorCores and lets the DMA pipeline overlap prefetch with compute.
    if block_b == B and B > 8:
        block_b = int(min(B, max(8, (((B + 1) // 2) + 7) // 8 * 8)))
    # TODO(synk): if even block_b == 1 exceeds the budget (huge T*D), a second
    # grid axis over T would be needed; not required for this module's shapes.
    return block_b


# --------------------------- Pallas kernel ------------------------------------

def _attention_kernel(h_ref, w_ref, b_ref, r_ref, alpha_ref):
    h = h_ref[...].astype(jnp.float32)                    # (bb, T, D)
    # M = tanh(H)  (EUP)
    m = jnp.tanh(h)
    # Linear(D, 1): scores = sum_D(M * w) + b  -> VPU mul + XLU lane reduce.
    # (Deliberately not an MXU matmul: a 1-lane output would be ~0.4% MXU fill.)
    w = w_ref[...].astype(jnp.float32)                    # (1, D)
    scores = jnp.sum(m * w[jnp.newaxis, :, :], axis=2)    # (bb, T)
    scores = scores + b_ref[0]                            # scalar bias from SMEM
    # softmax over T (dim=1 in the PyTorch module), max-subtracted for stability.
    s_max = jnp.max(scores, axis=1, keepdims=True)        # (bb, 1)
    e = jnp.exp(scores - s_max)
    denom = jnp.sum(e, axis=1, keepdims=True)             # (bb, 1)
    # EUP reciprocal instead of a divide (approx=True would also be fine and
    # fully free; kept exact so numerics match the reference bit-for-bit-ish).
    inv_denom = pl.reciprocal(denom, approx=False)
    alpha = e * inv_denom                                  # (bb, T)
    # r = sum_T (H * alpha)  -> VPU mul + XLU sublane reduce.
    r = jnp.sum(h * alpha[:, :, jnp.newaxis], axis=1)      # (bb, D)
    r_ref[...] = r.astype(r_ref.dtype)
    alpha_ref[...] = alpha.astype(alpha_ref.dtype)


# ------------------------------ wrapper ----------------------------------------

def attention_forward(h, w, b, *, block_b=None):
    """h: (B, T, D), w: (1, D), b: (1,)  ->  (r: (B, D) f32, alpha: (B, T) f32)."""
    B, T, D = h.shape

    vmem_cap = _vmem_capacity_bytes()
    vmem_budget = int(0.70 * vmem_cap)          # block-sizing budget w/ headroom
    vmem_limit = int(0.85 * vmem_cap)           # raise the default scoped limit

    if block_b is None:
        block_b = _choose_block_b(B, T, D, h.dtype, vmem_budget)
    block_b = int(min(block_b, B))

    grid = (pl.cdiv(B, block_b),)               # no jnp.pad: boundary block is
                                                # read-padded / write-masked
    w2 = w.reshape(1, D)
    b1 = b.reshape(1).astype(jnp.float32)       # scalar bias -> SMEM

    r, alpha = pl.pallas_call(
        _attention_kernel,
        out_shape=(jax.ShapeDtypeStruct((B, D), jnp.float32),
                   jax.ShapeDtypeStruct((B, T), jnp.float32)),
        grid=grid,
        in_specs=[
            pl.BlockSpec((block_b, T, D), lambda i: (i, 0, 0)),
            pl.BlockSpec((1, D), lambda i: (0, 0)),
            pl.BlockSpec(memory_space=pltpu.MemorySpace.SMEM),
        ],
        out_specs=(pl.BlockSpec((block_b, D), lambda i: (i, 0)),
                   pl.BlockSpec((block_b, T), lambda i: (i, 0))),
        compiler_params=pltpu.CompilerParams(
            dimension_semantics=("parallel",),
            vmem_limit_bytes=vmem_limit),
    )(h, w2, b1)
    return r, alpha


# ------------------------- pure-JAX reference -----------------------------------

def attention_ref(h, w, b):
    m = jnp.tanh(h)
    scores = jnp.sum(m * w[0][jnp.newaxis, jnp.newaxis, :], axis=-1) + b[0]
    alpha = jax.nn.softmax(scores, axis=1)
    r = jnp.sum(h * alpha[:, :, None], axis=1)
    return r, alpha


# ------------------------------ main ---------------------------------------------

if __name__ == "__main__":
    batch, seq, in_channel = 2, 8, 32

    key = jax.random.PRNGKey(0)
    kh, kw, kb = jax.random.split(key, 3)
    H = jax.random.normal(kh, (batch, seq, in_channel), jnp.float32)
    w = 0.1 * jax.random.normal(kw, (1, in_channel), jnp.float32)   # nn.Linear(D,1).weight
    b = 0.1 * jax.random.normal(kb, (1,), jnp.float32)              # nn.Linear(D,1).bias

    fwd = jax.jit(attention_forward)
    r, alpha = fwd(H, w, b)
    jax.block_until_ready((r, alpha))

    assert r.shape == (batch, in_channel), r.shape
    assert alpha.shape == (batch, seq), alpha.shape
    assert r.dtype == jnp.float32 and alpha.dtype == jnp.float32

    r_ref, alpha_ref = attention_ref(H, w, b)
    assert jnp.allclose(alpha, alpha_ref, atol=1e-5, rtol=1e-5)
    assert jnp.allclose(r, r_ref, atol=1e-5, rtol=1e-5)
    assert jnp.allclose(jnp.sum(alpha, axis=1), 1.0, atol=1e-5)

    # Exercise the no-pad boundary path: B not a multiple of block_b, so the
    # last grid step reads padded rows and masks its writes.
    B2 = 10
    H2 = jax.random.normal(kh, (B2, seq, in_channel), jnp.float32)
    fwd2 = jax.jit(functools.partial(attention_forward, block_b=8))
    r2, alpha2 = fwd2(H2, w, b)
    jax.block_until_ready((r2, alpha2))
    r2_ref, alpha2_ref = attention_ref(H2, w, b)
    assert r2.shape == (B2, in_channel) and alpha2.shape == (B2, seq)
    assert jnp.allclose(alpha2, alpha2_ref, atol=1e-5, rtol=1e-5)
    assert jnp.allclose(r2, r2_ref, atol=1e-5, rtol=1e-5)

    print("KERNEL_OK")
</pallas_src>

<mosaic_0001>
module attributes {stable_mosaic.version = 11 : i64} {
  func.func @_attention_kernel(%arg0: i32, %arg1: memref<2x8x32xf32, #tpu.memory_space<vmem>>, %arg2: memref<1x32xf32, #tpu.memory_space<vmem>>, %arg3: memref<1xf32, #tpu.memory_space<smem>>, %arg4: memref<2x32xf32, #tpu.memory_space<vmem>>, %arg5: memref<2x8xf32, #tpu.memory_space<vmem>>) attributes {dimension_semantics = [#tpu.dimension_semantics<parallel>], iteration_bounds = array<i64: 1>, scalar_prefetch = 0 : i64, scratch_operands = 0 : i64, tpu.core_type = #tpu.core_type<tc>, window_params = [{transform_indices = @transform_0, window_bounds = array<i64: 2, 8, 32>}, {pipeline_mode = #tpu.pipeline_mode<synchronous>, transform_indices = @transform_1, window_bounds = array<i64: 1, 32>}, {transform_indices = @transform_2, window_bounds = array<i64: 1>}, {transform_indices = @transform_3, window_bounds = array<i64: 2, 32>}, {transform_indices = @transform_4, window_bounds = array<i64: 2, 8>}]} {
    %c0 = arith.constant 0 : index
    %c0_0 = arith.constant 0 : index
    %c0_1 = arith.constant 0 : index
    %0 = vector.load %arg1[%c0, %c0_0, %c0_1] : memref<2x8x32xf32, #tpu.memory_space<vmem>>, vector<2x8x32xf32>
    %1 = math.tanh %0 : vector<2x8x32xf32>
    %c0_2 = arith.constant 0 : index
    %c0_3 = arith.constant 0 : index
    %2 = vector.load %arg2[%c0_2, %c0_3] : memref<1x32xf32, #tpu.memory_space<vmem>>, vector<1x32xf32>
    %3 = vector.shape_cast %2 : vector<1x32xf32> to vector<1x1x32xf32>
    %4 = vector.broadcast %3 : vector<1x1x32xf32> to vector<2x8x32xf32>
    %5 = arith.mulf %1, %4 : vector<2x8x32xf32>
    %cst = arith.constant dense<0.000000e+00> : vector<2x8xf32>
    %6 = vector.multi_reduction <add>, %5, %cst [2] : vector<2x8x32xf32> to vector<2x8xf32>
    %c0_4 = arith.constant 0 : index
    %7 = memref.load %arg3[%c0_4] : memref<1xf32, #tpu.memory_space<smem>>
    %8 = vector.broadcast %7 : f32 to vector<2x8xf32>
    %9 = arith.addf %6, %8 : vector<2x8xf32>
    %cst_5 = arith.constant dense<0xFF800000> : vector<2xf32>
    %10 = vector.multi_reduction <maximumf>, %9, %cst_5 [1] : vector<2x8xf32> to vector<2xf32>
    %11 = vector.shape_cast %10 : vector<2xf32> to vector<2x1xf32>
    %12 = vector.broadcast %11 : vector<2x1xf32> to vector<2x8xf32>
    %13 = arith.subf %9, %12 : vector<2x8xf32>
    %14 = math.exp %13 : vector<2x8xf32>
    %cst_6 = arith.constant dense<0.000000e+00> : vector<2xf32>
    %15 = vector.multi_reduction <add>, %14, %cst_6 [1] : vector<2x8xf32> to vector<2xf32>
    %16 = vector.shape_cast %15 : vector<2xf32> to vector<2x1xf32>
    %17 = tpu.reciprocal %16 : vector<2x1xf32> -> vector<2x1xf32>
    %18 = vector.broadcast %17 : vector<2x1xf32> to vector<2x8xf32>
    %19 = arith.mulf %14, %18 : vector<2x8xf32>
    %20 = vector.shape_cast %19 : vector<2x8xf32> to vector<2x8x1xf32>
    %21 = vector.broadcast %20 : vector<2x8x1xf32> to vector<2x8x32xf32>
    %22 = arith.mulf %0, %21 : vector<2x8x32xf32>
    %cst_7 = arith.constant dense<0.000000e+00> : vector<2x32xf32>
    %23 = vector.multi_reduction <add>, %22, %cst_7 [1] : vector<2x8x32xf32> to vector<2x32xf32>
    %c0_8 = arith.constant 0 : index
    %c0_9 = arith.constant 0 : index
    %24 = vector.load %arg4[%c0_8, %c0_9] : memref<2x32xf32, #tpu.memory_space<vmem>>, vector<2x32xf32>
    tpu.vector_store %arg4[%c0_8, %c0_9], %23 {strides = array<i32>} : memref<2x32xf32, #tpu.memory_space<vmem>>, vector<2x32xf32>,
    %c0_10 = arith.constant 0 : index
    %c0_11 = arith.constant 0 : index
    %25 = vector.load %arg5[%c0_10, %c0_11] : memref<2x8xf32, #tpu.memory_space<vmem>>, vector<2x8xf32>
    tpu.vector_store %arg5[%c0_10, %c0_11], %19 {strides = array<i32>} : memref<2x8xf32, #tpu.memory_space<vmem>>, vector<2x8xf32>,
    return
  }
  func.func @transform_0(%arg0: i32) -> (i32, i32, i32) {
    %c0_i32 = arith.constant 0 : i32
    %c0_i32_0 = arith.constant 0 : i32
    %c0_i32_1 = arith.constant 0 : i32
    return %arg0, %c0_i32, %c0_i32_0 : i32, i32, i32
  }
  func.func @transform_1(%arg0: i32) -> (i32, i32) {
    %c0_i32 = arith.constant 0 : i32
    %c0_i32_0 = arith.constant 0 : i32
    %c0_i32_1 = arith.constant 0 : i32
    return %c0_i32, %c0_i32_0 : i32, i32
  }
  func.func @transform_2(%arg0: i32) -> i32 {
    %c0_i32 = arith.constant 0 : i32
    %c0_i32_0 = arith.constant 0 : i32
    return %c0_i32 : i32
  }
  func.func @transform_3(%arg0: i32) -> (i32, i32) {
    %c0_i32 = arith.constant 0 : i32
    %c0_i32_0 = arith.constant 0 : i32
    return %arg0, %c0_i32 : i32, i32
  }
  func.func @transform_4(%arg0: i32) -> (i32, i32) {
    %c0_i32 = arith.constant 0 : i32
    %c0_i32_0 = arith.constant 0 : i32
    return %arg0, %c0_i32 : i32, i32
  }
}

</mosaic_0001>

<bundles_post_ra>
// kernel: attention_forward.1
= control target key start
LH: loop header
LB: loop body
LE: loop exit
PB: predicated region body
PF: predicated region fallthrough
CT: control target
= control target key end

     0   :  { %11 = vsyncpa [#allocation4], 0  ;;  %s357_s0 = inlined_call_operand.hbm [shape: f32[2,8,32], index: 0, kind: input, shape index: {}]   ;;  %s358_s1 = inlined_call_operand.vmem [shape: f32[1,32], index: 1, kind: input, shape index: {}]   ;;  %s359_s2 = inlined_call_operand.<no memory space> [shape: f32[1], index: 2, kind: input, shape index: {}]   ;;  %s360_s3 = inlined_call_operand.hbm [shape: f32[2,32], index: 3, kind: output, shape index: {0}]   ;;  %s361_s4 = inlined_call_operand.hbm [shape: f32[2,8], index: 4, kind: output, shape index: {1}]  }
   0x1   :  { %12 = vsyncpa [#allocation5], 0 }
   0x2   :  { %13 = vsyncpa [#allocation8], 0  ;;  %s18_s17 = sshll.u32 %s357_s0, 4  ;;  %s284_s18 = smov [#allocation3]   ;;  %s19_s17 = int_to_ptr.hbm [resolvable:$true] %s18_s17 }
   0x3   :  { %s20_s19 = sshll.u32 %s284_s18, 4  ;;  %s285_s20 = smov 128   ;;  %s21_s19 = int_to_ptr.vmem [resolvable:$true] %s20_s19 }
   0x4   :  { %s286_s21 = smov 8  }
   0x5   :  { %26 = dma.hbm_to_vmem [thread:$0]  %s19_s17, 256, %s21_s19, [#allocation4], %s285_s20, %s285_s20, %s286_s21  }
   0x6   :  { %278 = dma.done.wait [#allocation4], 256  }
   0x7   :  { %279 = vsyncadd [#allocation4], 4294967040  ;;  %v318_v0 = vld [vmem:[#allocation3] sm:$0xff]  ;;  %v321_v1 = vld [vmem:[#allocation3 + $0x8] sm:$0xff]  ;;  %vm45_vm0 = vcmask 261120   ;;  %v58_v10 = vlaneseq  ;;  %v53_v11 = vstv %s359_s2  ;;  %vm62_vm1 = vcmask 1041409  }
   0x8   :  { %196 = vtanh.f32 %v318_v0  ;;  %v195_v2 = vld [vmem:[%s358_s1] ss:$0 sm:$0xff]  ;;  %vm65_vm2 = vcmask 58368   ;;  %v287_v20 = vmov 0   ;;  %s288_s1 = smov [#allocation7]   ;;  %s171_s27 = sshll.u32 %s361_s4, 4  ;;  %s172_s27 = int_to_ptr.hbm [resolvable:$true] %s171_s27 }
   0x9   :  { %198 = vtanh.f32 %v321_v1  ;;  %v332_v12 = vand.u32 127, %v58_v10  ;;  %193 = vset.pattern.permute.xlu2 %v287_v20  ;;  %192 = vset.pattern.permute.xlu1 %v287_v20  ;;  %s169_s2 = sshll.u32 %s288_s1, 4  ;;  %s289_s4 = smov [#allocation6]   ;;  %vm146_vm7 = vcmask 254976   ;;  %s170_s2 = int_to_ptr.vmem [resolvable:$true] %s169_s2 }
   0xa   :  { %194 = vset.pattern.permute.xlu0 %v287_v20  ;;  %s158_s28 = sshll.u32 %s289_s4, 4  ;;  %s160_s5 = sshll.u32 %s360_s3, 4  ;;  %s159_s28 = int_to_ptr.vmem [resolvable:$true] %s158_s28  ;;  %s161_s5 = int_to_ptr.hbm [resolvable:$true] %s160_s5 }
   0xe   :  { %v197_v3 = vpop.eup %196 }
   0xf   :  { %v43_v4 = vmul.f32 %v197_v3, %v195_v2  ;;  %v199_v5 = vpop.eup %198 }
  0x10   :  { %v44_v7 = vmul.f32 %v199_v5, %v195_v2 }
  0x11   :  { %v46_v6 = vsel %vm45_vm0, %v43_v4, 0.0 }
  0x12   :  { %47 = vadd.xlane.f32.xlu0 %v46_v6  ;;  %v49_v8 = vsel %vm45_vm0, %v44_v7, 0.0 }
  0x1a   :  { %50 = vadd.xlane.f32.xlu0 %v49_v8 }
  0x85   :  { %v48_v9 = vpop.xlane.xlu0 %47 }
  0x86   :  { %v54_v13 = vadd.f32 %v53_v11, %v48_v9 }
  0x88   :  { %v60_v16 = vperm.slane %v54_v13, %v332_v12 }
  0x8d   :  { %v51_v14 = vpop.xlane.xlu0 %50 }
  0x8e   :  { %v55_v15 = vadd.f32 %v53_v11, %v51_v14 }
  0x90   :  { %v61_v17 = vperm.slane %v55_v15, %v332_v12 }
  0x92   :  { %v63_v18 = vsel %vm62_vm1, %v61_v17, %v60_v16 }
  0x93   :  { %v66_v19 = vsel %vm65_vm2, %v63_v18, -inf }
  0x94   :  { %67 = vmax.xlane.f32.xlu1 %v66_v19 }
 0x107   :  { %v68_v21 = vpop.xlane.xlu1 %67 }
 0x108   :  { %v70_v22 = vperm.slane %v68_v21, 0  ;;  %v71_v23 = vperm.slane %v68_v21, 1 }
 0x10a   :  { %v74_v24 = vsub.f32 %v54_v13, %v70_v22  ;;  %v75_v25 = vsub.f32 %v55_v15, %v71_v23 }
 0x10c   :  { %v76_v26 = vmul.f32 1.442695, %v74_v24  ;;  %v78_v27 = vmul.f32 1.442695, %v75_v25 }
 0x10e   :  { %200 = vpow2.f32 %v76_v26 }
 0x10f   :  { %202 = vpow2.f32 %v78_v27 }
 0x114   :  { %v201_v28 = vpop.eup %200 }
 0x115   :  { %v203_v29 = vpop.eup %202  ;;  %83 = vperm.xlu1 %192, %v201_v28  }
 0x116   :  { %86 = vperm.xlu2 %193, %v203_v29  }
 0x170   :  { %v87_v30 = vpop.permute.xlu2 %86 }
 0x171   :  { %v89_v32 = vperm.slane %v87_v30, %v332_v12 }
 0x187   :  { %v84_v31 = vpop.permute.xlu1 %83 }
 0x188   :  { %v88_v33 = vperm.slane %v84_v31, %v332_v12 }
 0x18a   :  { %v90_v34 = vsel %vm62_vm1, %v89_v32, %v88_v33 }
 0x18b   :  { %v92_v35 = vsel %vm65_vm2, %v90_v34, 0.0 }
 0x18c   :  { %93 = vadd.xlane.f32.xlu2 %v92_v35 }
 0x1ff   :  { %v94_v36 = vpop.xlane.xlu2 %93 }
 0x200   :  { %204 = vrcp.f32 %v94_v36  ;;  %v106_v40 = vand.u32 2147483648, %v94_v36  ;;  %v104_v42 = vand.u32 2147483647, %v94_v36  ;;  %vm100_vm4 = vweird.f32 %v94_v36 }
 0x202   :  { %v107_v44 = vor.u32 1.1754944e-38, %v106_v40  ;;  %vm105_vm6 = vcmp.eq.f32.partialorder %v104_v42, 8.507059e+37 }
 0x206   :  { %v205_v37 = vpop.eup %204 }
 0x207   :  { %v96_v38 = vmul.f32 %v205_v37, %v94_v36  ;;  %vm101_vm3 = vweird.f32 %v205_v37 }
 0x208   :  { %vm102_vm5 = vmor %vm100_vm4, %vm101_vm3 }
 0x209   :  { %v97_v39 = vsub.f32 1.0, %v96_v38 }
 0x20b   :  { %v98_v41 = vmul.f32 %v205_v37, %v97_v39 }
 0x20d   :  { %v99_v43 = vadd.f32 %v205_v37, %v98_v41 }
 0x20f   :  { %v103_v45 = vsel %vm102_vm5, %v205_v37, %v99_v43 }
 0x210   :  { %v108_v46 = vsel %vm105_vm6, %v107_v44, %v103_v45 }
 0x211   :  { %v111_v47 = vperm.slane %v108_v46, 1  ;;  %v110_v48 = vperm.slane %v108_v46, 0 }
 0x213   :  { %v115_v49 = vmul.f32 %v203_v29, %v111_v47  ;;  %v114_v50 = vmul.f32 %v201_v28, %v110_v48 }
 0x215   :  { %123 = vperm.xlu1 %192, %v115_v49   ;;  %118 = vperm.xlu0 %194, %v114_v50  }
 0x287   :  { %v124_v51 = vpop.permute.xlu1 %123  ;;  %v119_v52 = vpop.permute.xlu0 %118 }
 0x288   :  { %v127_v53 = vmul.f32 %v124_v51, %v321_v1  ;;  %v149_v54 = vperm.slane %v124_v51, %v332_v12  ;;  %v126_v55 = vmul.f32 %v119_v52, %v318_v0  ;;  %v148_v56 = vperm.slane %v119_v52, %v332_v12 }
 0x28a   :  { %v135_v57 = vsel %vm45_vm0, %v127_v53, 0.0  ;;  %v128_v58 = vsel %vm45_vm0, %v126_v55, 0.0  ;;  %v150_v59 = vsel %vm62_vm1, %v149_v54, %v148_v56 }
 0x28b   :  { %v136_v60 = vrot.slane %v135_v57, 4  ;;  %v129_v61 = vrot.slane %v128_v58, 4  ;;  %152 = vst.msk [vmem:[#allocation7] sm:$0x3] %vm65_vm2, %v150_v59 }
 0x28c   :  { %174 = dma.vmem_to_hbm [thread:$0]  %s170_s2, 32, %s172_s27, [#allocation8]  }
 0x28d   :  { %v137_v62 = vadd.f32 %v136_v60, %v135_v57  ;;  %v130_v63 = vadd.f32 %v129_v61, %v128_v58 }
 0x28f   :  { %v138_v1 = vrot.slane %v137_v62, 2  ;;  %v131_v2 = vrot.slane %v130_v63, 2 }
 0x291   :  { %v139_v0 = vadd.f32 %v138_v1, %v137_v62  ;;  %v132_v3 = vadd.f32 %v131_v2, %v130_v63 }
 0x293   :  { %v140_v4 = vrot.slane %v139_v0, 1  ;;  %v133_v5 = vrot.slane %v132_v3, 1 }
 0x295   :  { %v141_v6 = vadd.f32 %v140_v4, %v139_v0  ;;  %v134_v7 = vadd.f32 %v133_v5, %v132_v3 }
 0x297   :  { %v144_v8 = vsel %vm62_vm1, %v141_v6, %v134_v7 }
 0x298   :  { %147 = vst.msk [vmem:[#allocation6] sm:$0x3] %vm146_vm7, %v144_v8 }
 0x299   :  { %163 = dma.vmem_to_hbm [thread:$0]  %s159_s28, 32, %s161_s5, [#allocation5]  }
 0x29a   :  { %280 = dma.done.wait [#allocation5], 32  }
 0x29b   :  { %281 = vsyncadd [#allocation5], 4294967264 }
 0x29c   :  { %282 = dma.done.wait [#allocation8], 32  }
 0x29d   :  { %283 = vsyncadd [#allocation8], 4294967264 }
 0x29e   :  { %183 = vsyncpa [#allocation4], 1 }
 0x29f   :  { %184 = vsyncpa [#allocation5], 1 }
 0x2a0   :  { %185 = vsyncpa [#allocation8], 1 }

</bundles_post_ra>
